<compile_context>
chip_gen: v7x
topology: tpu7x:2x2x1
jax: 0.10.0
libtpu: 0.0.40
codegen_flags: <defaults>
</compile_context>

<pallas_src>
import functools

import numpy as np
import jax
import jax.numpy as jnp
from jax import lax
from jax.experimental import pallas as pl
from jax.experimental.pallas import tpu as pltpu


def _reverse_block_kernel(x_ref, rc_ref, w1_ref, s1_ref, b1_ref,
                          wd_ref, s2_ref, b2_ref, w3_ref, s3_ref, b3_ref,
                          o_ref, *, H, W, dilation, reverse):
    HW = H * W
    d = dilation

    x = x_ref[0].astype(jnp.float32)                      # (Cin, HW) lane-dense
    row = rc_ref[0:1, :]                                  # (1, HW) int32: h index
    col = rc_ref[1:2, :]                                  # (1, HW) int32: w index

    # ---- 1x1 expand conv (channels=M on sublanes, H*W=N on lanes) + BN + ReLU6 ----
    y1 = jnp.dot(w1_ref[...].astype(jnp.float32), x,
                 preferred_element_type=jnp.float32)      # (Chid, HW)
    y1 = jnp.clip(y1 * s1_ref[...] + b1_ref[...], 0.0, 6.0)
    # value the (virtual) zero padding takes after 1x1 conv + BN + ReLU6
    pad_val = jnp.clip(b1_ref[...], 0.0, 6.0)             # (Chid, 1)

    # ---- 3x3 depthwise conv (dense stride-1; implicit padding via border masks) ----
    wd = wd_ref[...].astype(jnp.float32)                  # (Chid, 9)
    acc = None
    for kh, dh in enumerate((-d, 0, d)):
        for kw, dw in enumerate((-d, 0, d)):
            shift = dh * W + dw
            tap = y1 if shift == 0 else pltpu.roll(y1, (-shift) % HW, 1)
            conds = []
            if dh < 0:
                conds.append(row >= d)
            elif dh > 0:
                conds.append(row < H - d)
            if dw < 0:
                conds.append(col >= d)
            elif dw > 0:
                conds.append(col < W - d)
            if conds:
                m = conds[0]
                for c in conds[1:]:
                    m = m & c
                tap = jnp.where(m, tap, pad_val)
            k = 3 * kh + kw
            term = tap * wd[:, k:k + 1]
            acc = term if acc is None else acc + term
    y2 = jnp.clip(acc * s2_ref[...] + b2_ref[...], 0.0, 6.0)     # (Chid, HW)

    # ---- 1x1 project conv + BN (+ residual) ----
    y3 = jnp.dot(w3_ref[...].astype(jnp.float32), y2,
                 preferred_element_type=jnp.float32)      # (Cout, HW)
    out = y3 * s3_ref[...] + b3_ref[...]
    if reverse:
        out = out + x                                     # stride==1 and Cin==Cout
    o_ref[0] = out.astype(o_ref.dtype)                    # lane-dense (Cout, HW) store


def reverse_block_forward(x, params, *, stride, dilation, reverse):
    """x: NCHW (B, Cin, H, W) like the PyTorch module.  Returns NCHW output."""
    B, Cin, H, W = x.shape
    HW = H * W
    Cout = params["w3"].shape[0]
    if reverse:
        assert stride == 1 and Cin == Cout

    x_flat = x.reshape(B, Cin, HW)          # free reshape of contiguous NCHW
    # static (row, col) index vectors so the kernel needs no integer div/mod
    rc = jnp.asarray(np.stack([np.repeat(np.arange(H), W),
                               np.tile(np.arange(W), H)]).astype(np.int32))

    kernel = functools.partial(_reverse_block_kernel, H=H, W=W,
                               dilation=dilation, reverse=reverse)

    def rep(a):                              # small whole-array (replicated) operand
        return pl.BlockSpec(a.shape, lambda b: (0,) * a.ndim)

    out_flat = pl.pallas_call(
        kernel,
        out_shape=jax.ShapeDtypeStruct((B, Cout, HW), x.dtype),
        grid=(B,),
        in_specs=[
            pl.BlockSpec((1, Cin, HW), lambda b: (b, 0, 0)),   # x: the only big DMA
            rep(rc),
            rep(params["w1"]), rep(params["s1"]), rep(params["b1"]),
            rep(params["wd"]), rep(params["s2"]), rep(params["b2"]),
            rep(params["w3"]), rep(params["s3"]), rep(params["b3"]),
        ],
        out_specs=pl.BlockSpec((1, Cout, HW), lambda b: (b, 0, 0)),
        compiler_params=pltpu.CompilerParams(dimension_semantics=("parallel",)),
    )(x_flat, rc, params["w1"], params["s1"], params["b1"],
      params["wd"], params["s2"], params["b2"],
      params["w3"], params["s3"], params["b3"])

    out = out_flat.reshape(B, Cout, H, W)
    if stride > 1:
        out = out[:, :, ::stride, ::stride]   # dense kernel output -> strided output
    return out


# ----------------------------- pure-JAX reference -----------------------------
def fixed_padding_nchw(x, kernel_size, dilation):
    k_eff = kernel_size + (kernel_size - 1) * (dilation - 1)
    pad_total = k_eff - 1
    pad_beg = pad_total // 2
    pad_end = pad_total - pad_beg
    return jnp.pad(x, ((0, 0), (0, 0), (pad_beg, pad_end), (pad_beg, pad_end)))


def ref_forward(x, params, *, stride, dilation, reverse):
    """Mirrors the PyTorch module (eval-mode BN folded to scale/bias)."""
    Chid = params["w1"].shape[0]
    xpad = fixed_padding_nchw(x, 3, dilation)
    y1 = jnp.einsum("bchw,dc->bdhw", xpad, params["w1"])
    y1 = jnp.clip(y1 * params["s1"].reshape(1, -1, 1, 1)
                  + params["b1"].reshape(1, -1, 1, 1), 0.0, 6.0)
    wd_hwio = params["wd"].reshape(Chid, 3, 3).transpose(1, 2, 0)[:, :, None, :]
    y2 = lax.conv_general_dilated(
        y1, wd_hwio, window_strides=(stride, stride), padding="VALID",
        rhs_dilation=(dilation, dilation),
        dimension_numbers=("NCHW", "HWIO", "NCHW"),
        feature_group_count=Chid)
    y2 = jnp.clip(y2 * params["s2"].reshape(1, -1, 1, 1)
                  + params["b2"].reshape(1, -1, 1, 1), 0.0, 6.0)
    y3 = jnp.einsum("bchw,dc->bdhw", y2, params["w3"])
    y3 = y3 * params["s3"].reshape(1, -1, 1, 1) + params["b3"].reshape(1, -1, 1, 1)
    return x + y3 if reverse else y3


def _fold_bn(kg, kb, km, kv, c):
    eps = 1e-5
    gamma = 1.0 + 0.1 * jax.random.normal(kg, (c,), jnp.float32)
    beta = 0.1 * jax.random.normal(kb, (c,), jnp.float32)
    mean = 0.1 * jax.random.normal(km, (c,), jnp.float32)
    var = 1.0 + 0.1 * jax.random.uniform(kv, (c,), jnp.float32)
    scale = gamma / jnp.sqrt(var + eps)
    bias = beta - mean * scale
    return scale[:, None], bias[:, None]


if __name__ == "__main__":
    # Module config: reverse_block(input=4, output=4, stride=1, dilation=1, ratio=2)
    Cin, Cout, stride, dilation, ratio = 4, 4, 1, 1, 2.0
    Chid = round(Cin * ratio)                   # hidden_dim = 8
    reverse = (stride == 1 and Cin == Cout)     # residual branch active
    B, H, W = 2, 16, 16

    key = jax.random.PRNGKey(0)
    ks = jax.random.split(key, 16)
    x = jax.random.normal(ks[0], (B, Cin, H, W), jnp.float32)    # NCHW like PyTorch

    s1, b1 = _fold_bn(ks[4], ks[5], ks[6], ks[7], Chid)
    s2, b2 = _fold_bn(ks[8], ks[9], ks[10], ks[11], Chid)
    s3, b3 = _fold_bn(ks[12], ks[13], ks[14], ks[15], Cout)
    params = dict(
        w1=0.3 * jax.random.normal(ks[1], (Chid, Cin), jnp.float32),    # expand 1x1
        wd=0.3 * jax.random.normal(ks[2], (Chid, 9), jnp.float32),      # depthwise 3x3
        w3=0.3 * jax.random.normal(ks[3], (Cout, Chid), jnp.float32),   # project 1x1
        s1=s1, b1=b1, s2=s2, b2=b2, s3=s3, b3=b3,
    )

    out = reverse_block_forward(x, params, stride=stride, dilation=dilation,
                                reverse=reverse)
    out = jax.block_until_ready(out)
    ref = ref_forward(x, params, stride=stride, dilation=dilation, reverse=reverse)
    assert out.shape == ref.shape, (out.shape, ref.shape)
    assert jnp.allclose(out, ref, rtol=1e-4, atol=1e-4), \
        float(jnp.max(jnp.abs(out - ref)))

    # also exercise the stride-2 (no-residual) path of the same kernel
    out2 = jax.block_until_ready(
        reverse_block_forward(x, params, stride=2, dilation=1, reverse=False))
    ref2 = ref_forward(x, params, stride=2, dilation=1, reverse=False)
    assert out2.shape == ref2.shape, (out2.shape, ref2.shape)
    assert jnp.allclose(out2, ref2, rtol=1e-4, atol=1e-4), \
        float(jnp.max(jnp.abs(out2 - ref2)))

    print("KERNEL_OK")
</pallas_src>

<mosaic_0001>
module attributes {stable_mosaic.version = 11 : i64} {
  func.func @_reverse_block_kernel(%arg0: i32, %arg1: memref<1x4x256xf32, #tpu.memory_space<vmem>>, %arg2: memref<2x256xi32, #tpu.memory_space<vmem>>, %arg3: memref<8x4xf32, #tpu.memory_space<vmem>>, %arg4: memref<8x1xf32, #tpu.memory_space<vmem>>, %arg5: memref<8x1xf32, #tpu.memory_space<vmem>>, %arg6: memref<8x9xf32, #tpu.memory_space<vmem>>, %arg7: memref<8x1xf32, #tpu.memory_space<vmem>>, %arg8: memref<8x1xf32, #tpu.memory_space<vmem>>, %arg9: memref<4x8xf32, #tpu.memory_space<vmem>>, %arg10: memref<4x1xf32, #tpu.memory_space<vmem>>, %arg11: memref<4x1xf32, #tpu.memory_space<vmem>>, %arg12: memref<1x4x256xf32, #tpu.memory_space<vmem>>) attributes {dimension_semantics = [#tpu.dimension_semantics<parallel>], iteration_bounds = array<i64: 2>, scalar_prefetch = 0 : i64, scratch_operands = 0 : i64, tpu.core_type = #tpu.core_type<tc>, window_params = [{transform_indices = @transform_0, window_bounds = array<i64: 1, 4, 256>}, {pipeline_mode = #tpu.pipeline_mode<synchronous>, transform_indices = @transform_1, window_bounds = array<i64: 2, 256>}, {pipeline_mode = #tpu.pipeline_mode<synchronous>, transform_indices = @transform_2, window_bounds = array<i64: 8, 4>}, {pipeline_mode = #tpu.pipeline_mode<synchronous>, transform_indices = @transform_3, window_bounds = array<i64: 8, 1>}, {pipeline_mode = #tpu.pipeline_mode<synchronous>, transform_indices = @transform_4, window_bounds = array<i64: 8, 1>}, {pipeline_mode = #tpu.pipeline_mode<synchronous>, transform_indices = @transform_5, window_bounds = array<i64: 8, 9>}, {pipeline_mode = #tpu.pipeline_mode<synchronous>, transform_indices = @transform_6, window_bounds = array<i64: 8, 1>}, {pipeline_mode = #tpu.pipeline_mode<synchronous>, transform_indices = @transform_7, window_bounds = array<i64: 8, 1>}, {pipeline_mode = #tpu.pipeline_mode<synchronous>, transform_indices = @transform_8, window_bounds = array<i64: 4, 8>}, {pipeline_mode = #tpu.pipeline_mode<synchronous>, transform_indices = @transform_9, window_bounds = array<i64: 4, 1>}, {pipeline_mode = #tpu.pipeline_mode<synchronous>, transform_indices = @transform_10, window_bounds = array<i64: 4, 1>}, {transform_indices = @transform_11, window_bounds = array<i64: 1, 4, 256>}]} {
    %c0 = arith.constant 0 : index
    %c0_0 = arith.constant 0 : index
    %c0_1 = arith.constant 0 : index
    %0 = vector.load %arg1[%c0, %c0_0, %c0_1] : memref<1x4x256xf32, #tpu.memory_space<vmem>>, vector<1x4x256xf32>
    %1 = vector.shape_cast %0 : vector<1x4x256xf32> to vector<4x256xf32>
    %c0_2 = arith.constant 0 : index
    %c0_3 = arith.constant 0 : index
    %2 = vector.load %arg2[%c0_2, %c0_3] : memref<2x256xi32, #tpu.memory_space<vmem>>, vector<1x256xi32>
    %c1 = arith.constant 1 : index
    %c0_4 = arith.constant 0 : index
    %3 = vector.load %arg2[%c1, %c0_4] : memref<2x256xi32, #tpu.memory_space<vmem>>, vector<1x256xi32>
    %c0_5 = arith.constant 0 : index
    %c0_6 = arith.constant 0 : index
    %4 = vector.load %arg3[%c0_5, %c0_6] : memref<8x4xf32, #tpu.memory_space<vmem>>, vector<8x4xf32>
    %cst = arith.constant dense<0.000000e+00> : vector<8x256xf32>
    %5 = tpu.matmul %4, %1, %cst {dimension_numbers = #tpu.dot_dimension_numbers<[1], [0], [0], [1], [0, 0, 1, 1], [], []>} : vector<8x4xf32>, vector<4x256xf32>, vector<8x256xf32> -> vector<8x256xf32>
    %c0_7 = arith.constant 0 : index
    %c0_8 = arith.constant 0 : index
    %6 = vector.load %arg4[%c0_7, %c0_8] : memref<8x1xf32, #tpu.memory_space<vmem>>, vector<8x1xf32>
    %7 = vector.broadcast %6 : vector<8x1xf32> to vector<8x256xf32>
    %8 = arith.mulf %5, %7 : vector<8x256xf32>
    %c0_9 = arith.constant 0 : index
    %c0_10 = arith.constant 0 : index
    %9 = vector.load %arg5[%c0_9, %c0_10] : memref<8x1xf32, #tpu.memory_space<vmem>>, vector<8x1xf32>
    %10 = vector.broadcast %9 : vector<8x1xf32> to vector<8x256xf32>
    %11 = arith.addf %8, %10 : vector<8x256xf32>
    %cst_11 = arith.constant 0.000000e+00 : f32
    %cst_12 = arith.constant 6.000000e+00 : f32
    %12 = vector.broadcast %cst_11 : f32 to vector<8x256xf32>
    %13 = arith.maximumf %12, %11 : vector<8x256xf32>
    %14 = vector.broadcast %cst_12 : f32 to vector<8x256xf32>
    %15 = arith.minimumf %14, %13 : vector<8x256xf32>
    %c0_13 = arith.constant 0 : index
    %c0_14 = arith.constant 0 : index
    %16 = vector.load %arg5[%c0_13, %c0_14] : memref<8x1xf32, #tpu.memory_space<vmem>>, vector<8x1xf32>
    %cst_15 = arith.constant 0.000000e+00 : f32
    %cst_16 = arith.constant 6.000000e+00 : f32
    %17 = vector.broadcast %cst_15 : f32 to vector<8x1xf32>
    %18 = arith.maximumf %17, %16 : vector<8x1xf32>
    %19 = vector.broadcast %cst_16 : f32 to vector<8x1xf32>
    %20 = arith.minimumf %19, %18 : vector<8x1xf32>
    %c0_17 = arith.constant 0 : index
    %c0_18 = arith.constant 0 : index
    %21 = vector.load %arg6[%c0_17, %c0_18] : memref<8x9xf32, #tpu.memory_space<vmem>>, vector<8x9xf32>
    %c17_i32 = arith.constant 17 : i32
    %22 = tpu.dynamic_rotate %15 by %c17_i32 dim 1 : vector<8x256xf32>, i32 -> vector<8x256xf32>
    %c1_i32 = arith.constant 1 : i32
    %23 = vector.broadcast %c1_i32 : i32 to vector<1x256xi32>
    %24 = arith.cmpi sge, %2, %23 : vector<1x256xi32>
    %c1_i32_19 = arith.constant 1 : i32
    %25 = vector.broadcast %c1_i32_19 : i32 to vector<1x256xi32>
    %26 = arith.cmpi sge, %3, %25 : vector<1x256xi32>
    %27 = arith.andi %24, %26 : vector<1x256xi1>
    %28 = vector.shape_cast %27 : vector<1x256xi1> to vector<1x256xi1>
    %29 = vector.broadcast %28 : vector<1x256xi1> to vector<8x256xi1>
    %30 = vector.shape_cast %20 : vector<8x1xf32> to vector<8x1xf32>
    %31 = vector.broadcast %30 : vector<8x1xf32> to vector<8x256xf32>
    %32 = arith.select %29, %22, %31 : vector<8x256xi1>, vector<8x256xf32>
    %33 = vector.extract_strided_slice %21 {offsets = [0, 0], sizes = [8, 1], strides = [1, 1]} : vector<8x9xf32> to vector<8x1xf32>
    %34 = vector.broadcast %33 : vector<8x1xf32> to vector<8x256xf32>
    %35 = arith.mulf %32, %34 : vector<8x256xf32>
    %c16_i32 = arith.constant 16 : i32
    %36 = tpu.dynamic_rotate %15 by %c16_i32 dim 1 : vector<8x256xf32>, i32 -> vector<8x256xf32>
    %c1_i32_20 = arith.constant 1 : i32
    %37 = vector.broadcast %c1_i32_20 : i32 to vector<1x256xi32>
    %38 = arith.cmpi sge, %2, %37 : vector<1x256xi32>
    %39 = vector.shape_cast %38 : vector<1x256xi1> to vector<1x256xi1>
    %40 = vector.broadcast %39 : vector<1x256xi1> to vector<8x256xi1>
    %41 = vector.shape_cast %20 : vector<8x1xf32> to vector<8x1xf32>
    %42 = vector.broadcast %41 : vector<8x1xf32> to vector<8x256xf32>
    %43 = arith.select %40, %36, %42 : vector<8x256xi1>, vector<8x256xf32>
    %44 = vector.extract_strided_slice %21 {offsets = [0, 1], sizes = [8, 1], strides = [1, 1]} : vector<8x9xf32> to vector<8x1xf32>
    %45 = vector.broadcast %44 : vector<8x1xf32> to vector<8x256xf32>
    %46 = arith.mulf %43, %45 : vector<8x256xf32>
    %47 = arith.addf %35, %46 : vector<8x256xf32>
    %c15_i32 = arith.constant 15 : i32
    %48 = tpu.dynamic_rotate %15 by %c15_i32 dim 1 : vector<8x256xf32>, i32 -> vector<8x256xf32>
    %c1_i32_21 = arith.constant 1 : i32
    %49 = vector.broadcast %c1_i32_21 : i32 to vector<1x256xi32>
    %50 = arith.cmpi sge, %2, %49 : vector<1x256xi32>
    %c15_i32_22 = arith.constant 15 : i32
    %51 = vector.broadcast %c15_i32_22 : i32 to vector<1x256xi32>
    %52 = arith.cmpi slt, %3, %51 : vector<1x256xi32>
    %53 = arith.andi %50, %52 : vector<1x256xi1>
    %54 = vector.shape_cast %53 : vector<1x256xi1> to vector<1x256xi1>
    %55 = vector.broadcast %54 : vector<1x256xi1> to vector<8x256xi1>
    %56 = vector.shape_cast %20 : vector<8x1xf32> to vector<8x1xf32>
    %57 = vector.broadcast %56 : vector<8x1xf32> to vector<8x256xf32>
    %58 = arith.select %55, %48, %57 : vector<8x256xi1>, vector<8x256xf32>
    %59 = vector.extract_strided_slice %21 {offsets = [0, 2], sizes = [8, 1], strides = [1, 1]} : vector<8x9xf32> to vector<8x1xf32>
    %60 = vector.broadcast %59 : vector<8x1xf32> to vector<8x256xf32>
    %61 = arith.mulf %58, %60 : vector<8x256xf32>
    %62 = arith.addf %47, %61 : vector<8x256xf32>
    %c1_i32_23 = arith.constant 1 : i32
    %63 = tpu.dynamic_rotate %15 by %c1_i32_23 dim 1 : vector<8x256xf32>, i32 -> vector<8x256xf32>
    %c1_i32_24 = arith.constant 1 : i32
    %64 = vector.broadcast %c1_i32_24 : i32 to vector<1x256xi32>
    %65 = arith.cmpi sge, %3, %64 : vector<1x256xi32>
    %66 = vector.shape_cast %65 : vector<1x256xi1> to vector<1x256xi1>
    %67 = vector.broadcast %66 : vector<1x256xi1> to vector<8x256xi1>
    %68 = vector.shape_cast %20 : vector<8x1xf32> to vector<8x1xf32>
    %69 = vector.broadcast %68 : vector<8x1xf32> to vector<8x256xf32>
    %70 = arith.select %67, %63, %69 : vector<8x256xi1>, vector<8x256xf32>
    %71 = vector.extract_strided_slice %21 {offsets = [0, 3], sizes = [8, 1], strides = [1, 1]} : vector<8x9xf32> to vector<8x1xf32>
    %72 = vector.broadcast %71 : vector<8x1xf32> to vector<8x256xf32>
    %73 = arith.mulf %70, %72 : vector<8x256xf32>
    %74 = arith.addf %62, %73 : vector<8x256xf32>
    %75 = vector.extract_strided_slice %21 {offsets = [0, 4], sizes = [8, 1], strides = [1, 1]} : vector<8x9xf32> to vector<8x1xf32>
    %76 = vector.broadcast %75 : vector<8x1xf32> to vector<8x256xf32>
    %77 = arith.mulf %15, %76 : vector<8x256xf32>
    %78 = arith.addf %74, %77 : vector<8x256xf32>
    %c255_i32 = arith.constant 255 : i32
    %79 = tpu.dynamic_rotate %15 by %c255_i32 dim 1 : vector<8x256xf32>, i32 -> vector<8x256xf32>
    %c15_i32_25 = arith.constant 15 : i32
    %80 = vector.broadcast %c15_i32_25 : i32 to vector<1x256xi32>
    %81 = arith.cmpi slt, %3, %80 : vector<1x256xi32>
    %82 = vector.shape_cast %81 : vector<1x256xi1> to vector<1x256xi1>
    %83 = vector.broadcast %82 : vector<1x256xi1> to vector<8x256xi1>
    %84 = vector.shape_cast %20 : vector<8x1xf32> to vector<8x1xf32>
    %85 = vector.broadcast %84 : vector<8x1xf32> to vector<8x256xf32>
    %86 = arith.select %83, %79, %85 : vector<8x256xi1>, vector<8x256xf32>
    %87 = vector.extract_strided_slice %21 {offsets = [0, 5], sizes = [8, 1], strides = [1, 1]} : vector<8x9xf32> to vector<8x1xf32>
    %88 = vector.broadcast %87 : vector<8x1xf32> to vector<8x256xf32>
    %89 = arith.mulf %86, %88 : vector<8x256xf32>
    %90 = arith.addf %78, %89 : vector<8x256xf32>
    %c241_i32 = arith.constant 241 : i32
    %91 = tpu.dynamic_rotate %15 by %c241_i32 dim 1 : vector<8x256xf32>, i32 -> vector<8x256xf32>
    %c15_i32_26 = arith.constant 15 : i32
    %92 = vector.broadcast %c15_i32_26 : i32 to vector<1x256xi32>
    %93 = arith.cmpi slt, %2, %92 : vector<1x256xi32>
    %c1_i32_27 = arith.constant 1 : i32
    %94 = vector.broadcast %c1_i32_27 : i32 to vector<1x256xi32>
    %95 = arith.cmpi sge, %3, %94 : vector<1x256xi32>
    %96 = arith.andi %93, %95 : vector<1x256xi1>
    %97 = vector.shape_cast %96 : vector<1x256xi1> to vector<1x256xi1>
    %98 = vector.broadcast %97 : vector<1x256xi1> to vector<8x256xi1>
    %99 = vector.shape_cast %20 : vector<8x1xf32> to vector<8x1xf32>
    %100 = vector.broadcast %99 : vector<8x1xf32> to vector<8x256xf32>
    %101 = arith.select %98, %91, %100 : vector<8x256xi1>, vector<8x256xf32>
    %102 = vector.extract_strided_slice %21 {offsets = [0, 6], sizes = [8, 1], strides = [1, 1]} : vector<8x9xf32> to vector<8x1xf32>
    %103 = vector.broadcast %102 : vector<8x1xf32> to vector<8x256xf32>
    %104 = arith.mulf %101, %103 : vector<8x256xf32>
    %105 = arith.addf %90, %104 : vector<8x256xf32>
    %c240_i32 = arith.constant 240 : i32
    %106 = tpu.dynamic_rotate %15 by %c240_i32 dim 1 : vector<8x256xf32>, i32 -> vector<8x256xf32>
    %c15_i32_28 = arith.constant 15 : i32
    %107 = vector.broadcast %c15_i32_28 : i32 to vector<1x256xi32>
    %108 = arith.cmpi slt, %2, %107 : vector<1x256xi32>
    %109 = vector.shape_cast %108 : vector<1x256xi1> to vector<1x256xi1>
    %110 = vector.broadcast %109 : vector<1x256xi1> to vector<8x256xi1>
    %111 = vector.shape_cast %20 : vector<8x1xf32> to vector<8x1xf32>
    %112 = vector.broadcast %111 : vector<8x1xf32> to vector<8x256xf32>
    %113 = arith.select %110, %106, %112 : vector<8x256xi1>, vector<8x256xf32>
    %114 = vector.extract_strided_slice %21 {offsets = [0, 7], sizes = [8, 1], strides = [1, 1]} : vector<8x9xf32> to vector<8x1xf32>
    %115 = vector.broadcast %114 : vector<8x1xf32> to vector<8x256xf32>
    %116 = arith.mulf %113, %115 : vector<8x256xf32>
    %117 = arith.addf %105, %116 : vector<8x256xf32>
    %c239_i32 = arith.constant 239 : i32
    %118 = tpu.dynamic_rotate %15 by %c239_i32 dim 1 : vector<8x256xf32>, i32 -> vector<8x256xf32>
    %c15_i32_29 = arith.constant 15 : i32
    %119 = vector.broadcast %c15_i32_29 : i32 to vector<1x256xi32>
    %120 = arith.cmpi slt, %2, %119 : vector<1x256xi32>
    %c15_i32_30 = arith.constant 15 : i32
    %121 = vector.broadcast %c15_i32_30 : i32 to vector<1x256xi32>
    %122 = arith.cmpi slt, %3, %121 : vector<1x256xi32>
    %123 = arith.andi %120, %122 : vector<1x256xi1>
    %124 = vector.shape_cast %123 : vector<1x256xi1> to vector<1x256xi1>
    %125 = vector.broadcast %124 : vector<1x256xi1> to vector<8x256xi1>
    %126 = vector.shape_cast %20 : vector<8x1xf32> to vector<8x1xf32>
    %127 = vector.broadcast %126 : vector<8x1xf32> to vector<8x256xf32>
    %128 = arith.select %125, %118, %127 : vector<8x256xi1>, vector<8x256xf32>
    %129 = vector.extract_strided_slice %21 {offsets = [0, 8], sizes = [8, 1], strides = [1, 1]} : vector<8x9xf32> to vector<8x1xf32>
    %130 = vector.broadcast %129 : vector<8x1xf32> to vector<8x256xf32>
    %131 = arith.mulf %128, %130 : vector<8x256xf32>
    %132 = arith.addf %117, %131 : vector<8x256xf32>
    %c0_31 = arith.constant 0 : index
    %c0_32 = arith.constant 0 : index
    %133 = vector.load %arg7[%c0_31, %c0_32] : memref<8x1xf32, #tpu.memory_space<vmem>>, vector<8x1xf32>
    %134 = vector.broadcast %133 : vector<8x1xf32> to vector<8x256xf32>
    %135 = arith.mulf %132, %134 : vector<8x256xf32>
    %c0_33 = arith.constant 0 : index
    %c0_34 = arith.constant 0 : index
    %136 = vector.load %arg8[%c0_33, %c0_34] : memref<8x1xf32, #tpu.memory_space<vmem>>, vector<8x1xf32>
    %137 = vector.broadcast %136 : vector<8x1xf32> to vector<8x256xf32>
    %138 = arith.addf %135, %137 : vector<8x256xf32>
    %cst_35 = arith.constant 0.000000e+00 : f32
    %cst_36 = arith.constant 6.000000e+00 : f32
    %139 = vector.broadcast %cst_35 : f32 to vector<8x256xf32>
    %140 = arith.maximumf %139, %138 : vector<8x256xf32>
    %141 = vector.broadcast %cst_36 : f32 to vector<8x256xf32>
    %142 = arith.minimumf %141, %140 : vector<8x256xf32>
    %c0_37 = arith.constant 0 : index
    %c0_38 = arith.constant 0 : index
    %143 = vector.load %arg9[%c0_37, %c0_38] : memref<4x8xf32, #tpu.memory_space<vmem>>, vector<4x8xf32>
    %cst_39 = arith.constant dense<0.000000e+00> : vector<4x256xf32>
    %144 = tpu.matmul %143, %142, %cst_39 {dimension_numbers = #tpu.dot_dimension_numbers<[1], [0], [0], [1], [0, 0, 1, 1], [], []>} : vector<4x8xf32>, vector<8x256xf32>, vector<4x256xf32> -> vector<4x256xf32>
    %c0_40 = arith.constant 0 : index
    %c0_41 = arith.constant 0 : index
    %145 = vector.load %arg10[%c0_40, %c0_41] : memref<4x1xf32, #tpu.memory_space<vmem>>, vector<4x1xf32>
    %146 = vector.broadcast %145 : vector<4x1xf32> to vector<4x256xf32>
    %147 = arith.mulf %144, %146 : vector<4x256xf32>
    %c0_42 = arith.constant 0 : index
    %c0_43 = arith.constant 0 : index
    %148 = vector.load %arg11[%c0_42, %c0_43] : memref<4x1xf32, #tpu.memory_space<vmem>>, vector<4x1xf32>
    %149 = vector.broadcast %148 : vector<4x1xf32> to vector<4x256xf32>
    %150 = arith.addf %147, %149 : vector<4x256xf32>
    %151 = arith.addf %150, %1 : vector<4x256xf32>
    %c0_44 = arith.constant 0 : index
    %c0_45 = arith.constant 0 : index
    %c0_46 = arith.constant 0 : index
    %152 = vector.load %arg12[%c0_44, %c0_45, %c0_46] : memref<1x4x256xf32, #tpu.memory_space<vmem>>, vector<1x4x256xf32>
    %153 = vector.shape_cast %152 : vector<1x4x256xf32> to vector<4x256xf32>
    %154 = vector.shape_cast %151 : vector<4x256xf32> to vector<1x4x256xf32>
    tpu.vector_store %arg12[%c0_44, %c0_45, %c0_46], %154 {strides = array<i32>} : memref<1x4x256xf32, #tpu.memory_space<vmem>>, vector<1x4x256xf32>,
    return
  }
  func.func @transform_0(%arg0: i32) -> (i32, i32, i32) {
    %c0_i32 = arith.constant 0 : i32
    %c0_i32_0 = arith.constant 0 : i32
    %c0_i32_1 = arith.constant 0 : i32
    return %arg0, %c0_i32, %c0_i32_0 : i32, i32, i32
  }
  func.func @transform_1(%arg0: i32) -> (i32, i32) {
    %c0_i32 = arith.constant 0 : i32
    %c0_i32_0 = arith.constant 0 : i32
    %c0_i32_1 = arith.constant 0 : i32
    return %c0_i32, %c0_i32_0 : i32, i32
  }
  func.func @transform_2(%arg0: i32) -> (i32, i32) {
    %c0_i32 = arith.constant 0 : i32
    %c0_i32_0 = arith.constant 0 : i32
    %c0_i32_1 = arith.constant 0 : i32
    return %c0_i32, %c0_i32_0 : i32, i32
  }
  func.func @transform_3(%arg0: i32) -> (i32, i32) {
    %c0_i32 = arith.constant 0 : i32
    %c0_i32_0 = arith.constant 0 : i32
    %c0_i32_1 = arith.constant 0 : i32
    return %c0_i32, %c0_i32_0 : i32, i32
  }
  func.func @transform_4(%arg0: i32) -> (i32, i32) {
    %c0_i32 = arith.constant 0 : i32
    %c0_i32_0 = arith.constant 0 : i32
    %c0_i32_1 = arith.constant 0 : i32
    return %c0_i32, %c0_i32_0 : i32, i32
  }
  func.func @transform_5(%arg0: i32) -> (i32, i32) {
    %c0_i32 = arith.constant 0 : i32
    %c0_i32_0 = arith.constant 0 : i32
    %c0_i32_1 = arith.constant 0 : i32
    return %c0_i32, %c0_i32_0 : i32, i32
  }
  func.func @transform_6(%arg0: i32) -> (i32, i32) {
    %c0_i32 = arith.constant 0 : i32
    %c0_i32_0 = arith.constant 0 : i32
    %c0_i32_1 = arith.constant 0 : i32
    return %c0_i32, %c0_i32_0 : i32, i32
  }
  func.func @transform_7(%arg0: i32) -> (i32, i32) {
    %c0_i32 = arith.constant 0 : i32
    %c0_i32_0 = arith.constant 0 : i32
    %c0_i32_1 = arith.constant 0 : i32
    return %c0_i32, %c0_i32_0 : i32, i32
  }
  func.func @transform_8(%arg0: i32) -> (i32, i32) {
    %c0_i32 = arith.constant 0 : i32
    %c0_i32_0 = arith.constant 0 : i32
    %c0_i32_1 = arith.constant 0 : i32
    return %c0_i32, %c0_i32_0 : i32, i32
  }
  func.func @transform_9(%arg0: i32) -> (i32, i32) {
    %c0_i32 = arith.constant 0 : i32
    %c0_i32_0 = arith.constant 0 : i32
    %c0_i32_1 = arith.constant 0 : i32
    return %c0_i32, %c0_i32_0 : i32, i32
  }
  func.func @transform_10(%arg0: i32) -> (i32, i32) {
    %c0_i32 = arith.constant 0 : i32
    %c0_i32_0 = arith.constant 0 : i32
    %c0_i32_1 = arith.constant 0 : i32
    return %c0_i32, %c0_i32_0 : i32, i32
  }
  func.func @transform_11(%arg0: i32) -> (i32, i32, i32) {
    %c0_i32 = arith.constant 0 : i32
    %c0_i32_0 = arith.constant 0 : i32
    %c0_i32_1 = arith.constant 0 : i32
    return %arg0, %c0_i32, %c0_i32_0 : i32, i32, i32
  }
}

</mosaic_0001>

<bundles_post_ra>
// kernel: tpu_custom_call.1
= control target key start
LH: loop header
LB: loop body
LE: loop exit
PB: predicated region body
PF: predicated region fallthrough
CT: control target
= control target key end

     0   :  { %s1570_s0 = inlined_call_operand.vmem [shape: f32[2,4,256], index: 0, kind: input, shape index: {}]   ;;  %s1571_s1 = inlined_call_operand.vmem [shape: s32[2,256], index: 1, kind: input, shape index: {}]   ;;  %s1572_s2 = inlined_call_operand.vmem [shape: f32[8,4], index: 2, kind: input, shape index: {}]   ;;  %s1573_s3 = inlined_call_operand.vmem [shape: f32[8,1], index: 3, kind: input, shape index: {}]   ;;  %s1574_s4 = inlined_call_operand.vmem [shape: f32[8,1], index: 4, kind: input, shape index: {}]   ;;  %s1575_s5 = inlined_call_operand.vmem [shape: f32[8,9], index: 5, kind: input, shape index: {}]   ;;  %s1576_s6 = inlined_call_operand.vmem [shape: f32[8,1], index: 6, kind: input, shape index: {}]   ;;  %s1577_s7 = inlined_call_operand.vmem [shape: f32[8,1], index: 7, kind: input, shape index: {}]   ;;  %s1578_s8 = inlined_call_operand.vmem [shape: f32[4,8], index: 8, kind: input, shape index: {}]   ;;  %s1579_s9 = inlined_call_operand.vmem [shape: f32[4,1], index: 9, kind: input, shape index: {}]   ;;  %s1580_s10 = inlined_call_operand.vmem [shape: f32[4,1], index: 10, kind: input, shape index: {}]   ;;  %s1581_s11 = inlined_call_operand.hbm [shape: f32[2,4,256], index: 11, kind: output, shape index: {}]  }
   0x1   :  { %1582 = sst [smem:[#allocation5_spill]] %s1570_s0 }
   0x2   :  { %1583 = sst [smem:[#allocation6_spill]] %s1572_s2 }
   0x3   :  { %16 = vsyncpa [#allocation3], 0 }
   0x4   :  { %18 = vsyncpa [#allocation3 + $0x1], 0  ;;  %s1167_s17 = smov 0   ;;  %s1169_s18 = smov 0  }
   0x5   :  { %s1171_s19 = smov 0   ;;  %s1173_s20 = smov 0  }
   0x6 LB: > { %s1188_s21 = sadd.s32 4294967295, %s1086_s20   ;;  %s935_s22 = sadd.s32 4294967294, %s1086_s20   ;;  %s1086_s20 = sphi %s1173_s20, %s1619_s20   ;;  %s1082_s19 = sphi %s1171_s19, %s1618_s19   ;;  %s1078_s18 = sphi %s1169_s18, %s1617_s18   ;;  %s1074_s17 = sphi %s1167_s17, %s1616_s17  }
   0x7   : > { %s1192_s23 = sadd.s32 1, %s1086_s20   ;;  %s267_s24 = sadd.s32 1, %s1082_s19 }
   0x8   : > { %s264_s25 = ssub.s32 %s1086_s20, %s1192_s23  ;;  %p277_p0 = scmp.ne.s32.totalorder %s1082_s19, %s1078_s18 }
   0x9   : > { %p265_p1 = scmp.eq.s32.totalorder %s264_s25, 0  ;;  %p278_p2 = scmp.eq.s32.totalorder %s1188_s21, 1 }
   0xa   : > { %p283_p3 = scmp.ne.s32.totalorder %s1078_s18, %s1074_s17  ;;  %p284_p4 = scmp.eq.s32.totalorder %s935_s22, 1 }
   0xb   : > { %s1203_s26 = scalar_select %p265_p1, %s1082_s19, %s267_s24  }
   0xc   : > { %p1205_p5 = por %p278_p2, %p277_p0  ;;  %p1209_p6 = por %p284_p4, %p283_p3 }
   0xd   : > { %p938_p7 = scmp.ge.s32.totalorder %s1086_s20, 1  ;;  %p340_p8 = scmp.lt.s32.totalorder %s1086_s20, 3 }
   0xf   : > { %p341_p9 = pnand %p938_p7, %p340_p8 }
  0x10   : > { %p380_p10 = scmp.lt.s32.totalorder (!%p341_p9), %s1188_s21, 1  ;;  %v1088_v0 = vmov (!%p341_p9), 0.0   ;;  %v1089_v1 = vmov (!%p341_p9), 0   ;;  %v472_v2 = vld [vmem:[%s1573_s3] sm:$0xff] (!%p341_p9)  ;;  %s1586_s0 = sld [smem:[#allocation5_spill]] (!%p341_p9)  ;;  %vm396_vm0 = vcmask (!%p341_p9), 1043456   ;;  %v499_v47 = vlaneseq (!%p341_p9) }
  0x11   : > { %344 = sbr.rel (%p341_p9) target bundleno = 659 (0x293), region = 64  ;;  %465 = vmatprep.mubr.f32.mxu0 (!%p341_p9), %v1088_v0  ;;  %1011 = vset.pattern.permute.xlu0 (!%p341_p9), %v1089_v1  ;;  %v480_v3 = vld [vmem:[%s1574_s4] sm:$0xff] (!%p341_p9)  ;;  %s1587_s2 = sld [smem:[#allocation6_spill]] (!%p341_p9)  ;;  %vm392_vm1 = vcmask (!%p341_p9), 31744   ;;  %v1090_v10 = vmov (!%p341_p9), 1   ;;  %v1091_v11 = vmov (!%p341_p9), 2  }
  0x12   : > { %475 = vperm.xlu0 (!%p341_p9), %1011, %v472_v2   ;;  %v492_v4 = vmax.f32 (!%p341_p9), %v480_v3, 0.0  ;;  %v494_v5 = vld [vmem:[%s1575_s5] sm:$0xff] (!%p341_p9)  ;;  %1012 = vset.pattern.permute.xlu1 (!%p341_p9), %v1089_v1  ;;  %v1092_v12 = vmov (!%p341_p9), 4   ;;  %v1093_v13 = vmov (!%p341_p9), 3   ;;  %v1094_v14 = vmov (!%p341_p9), 5   ;;  %s1098_s13 = smov (!%p341_p9), 15  }
  0x13   : > { %527 = vperm.xlu1 (!%p341_p9), %1012, %v494_v5   ;;  %830 = vmatprep.mubr.f32.mxu1 (!%p341_p9), %v1088_v0  ;;  %v1095_v15 = vmov (!%p341_p9), 7   ;;  %v1096_v16 = vmov (!%p341_p9), 6   ;;  %v1097_v17 = vmov (!%p341_p9), 8   ;;  %s1100_s15 = smov (!%p341_p9), 1   ;;  %s1101_s16 = smov (!%p341_p9), 16   ;;  %v741_v30 = vld [vmem:[%s1576_s6] sm:$0xff] (!%p341_p9) }
  0x14   : > { %v493_v6 = vmin.f32 (!%p341_p9), %v492_v4, 6.0  ;;  %s1103_s24 = smov (!%p341_p9), 113   ;;  %s1104_s25 = smov (!%p341_p9), 112   ;;  %v749_v31 = vld [vmem:[%s1577_s7] sm:$0xff] (!%p341_p9)  ;;  %v509_v50 = vshrl.u32 (!%p341_p9), %v499_v47, 7  ;;  %v1323_v57 = vand.u32 (!%p341_p9), 127, %v499_v47 }
  0x15   : > { %v845_v32 = vld [vmem:[%s1580_s10] sm:$0xf] (!%p341_p9)  ;;  %s377_s30 = sand.u32 (!%p341_p9), 1, %s1078_s18  }
  0x16   : > { %483 = vperm.xlu0 (!%p341_p9), %1011, %v480_v3   ;;  %v837_v33 = vld [vmem:[%s1579_s9] sm:$0xf] (!%p341_p9)  ;;  %v1314_v52 = vsub.s32 (!%p341_p9), 0, %v509_v50  ;;  %v1320_v55 = vsub.s32 (!%p341_p9), 1, %v509_v50  ;;  %vm536_vm7 = vcmp.lt.s32.totalorder (!%p341_p9), %v1323_v57, 16  ;;  %vm501_vm9 = vcmp.lt.s32.totalorder (!%p341_p9), %v1323_v57, 17 }
  0x17   : > { %520 = vperm.xlu1 (!%p341_p9), %1012, %v493_v6   ;;  %v389_v9 = vld [vmem:[%s1587_s2] sm:$0xff] (!%p341_p9)  ;;  %vm564_vm15 = vcmp.lt.s32.totalorder (!%p341_p9), %v1323_v57, 15  ;;  %s939_s12 = sshll.u32 (!%p341_p9), %s377_s30, 3 }
  0x18   : > { %s381_s14 = scalar_select %p380_p10, %s1188_s21, 1  ;;  %v1299_v45 = vld [vmem:[%s1571_s1] ss:$2 sm:$0x3] }
  0x19   : > { %v1304_v46 = vld [vmem:[%s1571_s1 + $0x1] ss:$2 sm:$0x3]  ;;  %vm504_vm2 = vcmp.ge.s32.totalorder %v1299_v45, 1  ;;  %vm661_vm8 = vcmp.lt.s32.totalorder %v1299_v45, 15 }
  0x1a   : > { %s952_s22 = sshll.u32 %s381_s14, 3  ;;  %1013 = vset.pattern.permute.xlu0 %v1090_v10  ;;  %s1099_s14 = smov 17   ;;  %vm505_vm3 = vcmp.ge.s32.totalorder %v1304_v46, 1  ;;  %vm567_vm5 = vcmp.lt.s32.totalorder %v1304_v46, 15  ;;  %v539_v56 = vsel %vm504_vm2, 1, %v1089_v1  ;;  %v691_v4 = vsel %vm661_vm8, 1, %v1089_v1 }
  0x1b   : > { %s384_s29 = scalar_lea.vmem %s1586_s0, %s952_s22  ;;  %553 = vperm.xlu0 %1013, %v494_v5   ;;  %1014 = vset.pattern.permute.xlu1 %v1091_v11  ;;  %s1102_s22 = smov 127   ;;  %vm506_vm4 = vmand %vm504_vm2, %vm505_vm3  ;;  %v543_v61 = vrot.slane %v539_v56, %v1314_v52  ;;  %v547_v62 = vrot.slane %v539_v56, %v1320_v55  ;;  %v695_v45 = vrot.slane %v691_v4, %v1314_v52 }
  0x1c   : > { %v1231_v7 = vld [vmem:[%s384_s29] sm:$0xff]  ;;  %583 = vperm.xlu1 %1014, %v494_v5   ;;  %v507_v54 = vsel %vm506_vm4, 1, %v1089_v1  ;;  %vm568_vm6 = vmand %vm504_vm2, %vm567_vm5  ;;  %vm630_vm2 = vcmp.lt.s32.totalorder %v1323_v57, 127 }
  0x1d   : > { %v1235_v8 = vcombine.high %v1231_v7, %v1231_v7  ;;  %v511_v58 = vrot.slane %v507_v54, %v1314_v52  ;;  %v569_v60 = vsel %vm568_vm6, 1, %v1089_v1  ;;  %v515_v63 = vrot.slane %v507_v54, %v1320_v55  ;;  %vm662_vm13 = vmand %vm661_vm8, %vm505_vm3 }
  0x1e   : > { %v573_v2 = vrot.slane %v569_v60, %v1314_v52  ;;  %v577_v3 = vrot.slane %v569_v60, %v1320_v55  ;;  %vm1347_vm11 = vcmp.eq.s32.totalorder %v543_v61, 1  ;;  %vm1351_vm12 = vcmp.eq.s32.totalorder %v547_v62, 1 }
  0x1f   : > { %943 = vmatprep.subr.msk.mxu0 %vm396_vm0, %v1235_v8  ;;  %1016 = vset.pattern.permute.xlu0 %v1092_v12  ;;  %vm1337_vm10 = vcmp.eq.s32.totalorder %v511_v58, 1  ;;  %vm1359_vm14 = vcmp.eq.s32.totalorder %v515_v63, 1 }
  0x20   : > { %944 = vmatpush1.msk.msra.mxu0 %vm396_vm0, %v1231_v7  ;;  %619 = vperm.xlu0 %1016, %v494_v5   ;;  %vm1364_vm0 = vcmp.eq.s32.totalorder %v573_v2, 1 }
  0x21   : > { %945 = vmatmul.mubr.msk.f32.vlgmr.msra.gmra.mrb[0].mxu0 %vm392_vm1, %v389_v9  ;;  %1015 = vset.pattern.permute.xlu1 %v1093_v13  ;;  %v597_v9 = vsel %vm505_vm3, 1, %v1089_v1  ;;  %vm1368_vm1 = vcmp.eq.s32.totalorder %v577_v3, 1  ;;  %vm594_vm3 = vcmp.lt.s32.totalorder %v1323_v57, 1 }
  0x22   : > { %611 = vperm.xlu1 %1015, %v494_v5  }
  0x24   : > { %1017 = vset.pattern.permute.xlu0 %v1094_v14 }
  0x25   : > { %647 = vperm.xlu0 %1017, %v494_v5  }
  0x26   : > { %1019 = vset.pattern.permute.xlu1 %v1095_v15 }
  0x27   : > { %705 = vperm.xlu1 %1019, %v494_v5  }
  0x29   : > { %1018 = vset.pattern.permute.xlu0 %v1096_v16 }
  0x2a   : > { %677 = vperm.xlu0 %1018, %v494_v5  }
  0x2b   : > { %1020 = vset.pattern.permute.xlu1 %v1097_v17 }
  0x2c   : > { %734 = vperm.xlu1 %1020, %v494_v5   ;;  %v633_v5 = vsel %vm567_vm5, 1, %v1089_v1 }
  0x2d   : > { %v641_v58 = vrot.slane %v633_v5, %v1320_v55 }
  0x2e   : > { %1021 = vset.pattern.permute.xlu0 %v1089_v1 }
  0x30   : > { %1022 = vset.pattern.permute.xlu1 %v1089_v1 }
  0x91   : > { %v476_v18 = vpop.permute.xlu0 %475 }
  0x92   : > { %v1276_v34 = vpop.permute.xlu1 %527 }
  0x95   : > { %v484_v22 = vpop.permute.xlu0 %483 }
  0x96   : > { %v1278_v35 = vpop.permute.xlu1 %520 }
  0x9a   : > { %v1282_v37 = vpop.permute.xlu0 %553 }
  0x9b   : > { %v1280_v36 = vpop.permute.xlu1 %583 }
  0x9f   : > { %v1286_v39 = vpop.permute.xlu0 %619 }
  0xa1   : > { %v1284_v38 = vpop.permute.xlu1 %611 }
  0xa4   : > { %v1290_v41 = vpop.permute.xlu0 %647 }
  0xa6   : > { %v1288_v40 = vpop.permute.xlu1 %705 }
  0xa9   : > { %v1294_v43 = vpop.permute.xlu0 %677 }
  0xab   : > { %v1292_v42 = vpop.permute.xlu1 %734 }
  0xf4   : > { %v467_v19 = vpop.f32.mrb[0].mxu0 }
  0xf5   : > { %v478_v20 = vmul.f32 %v476_v18, %v467_v19  ;;  %v469_v21 = vpop.f32.mrb[1].mxu0  ;;  %v601_v19 = vrot.slane %v597_v9, %v1314_v52 }
  0xf6   : > { %v479_v26 = vmul.f32 %v476_v18, %v469_v21 }
  0xf7   : > { %v486_v23 = vadd.f32 %v484_v22, %v478_v20  ;;  %v605_v20 = vrot.slane %v597_v9, %v1320_v55  ;;  %vm1400_vm4 = vcmp.eq.s32.totalorder %v601_v19, 1  ;;  %v699_v19 = vrot.slane %v691_v4, %v1320_v55 }
  0xf8   : > { %v487_v27 = vadd.f32 %v484_v22, %v479_v26 }
  0xf9   : > { %v488_v24 = vmax.f32 %v486_v23, 0.0  ;;  %vm1404_vm6 = vcmp.eq.s32.totalorder %v605_v20, 1 }
  0xfa   : > { %v489_v28 = vmax.f32 %v487_v27, 0.0 }
  0xfb   : > { %v1244_v25 = vmin.f32 %v488_v24, 6.0  ;;  %v663_v24 = vsel %vm662_vm13, 1, %v1089_v1 }
  0xfc   : > { %v1252_v29 = vmin.f32 %v489_v28, 6.0  ;;  %v667_v60 = vrot.slane %v663_v24, %v1314_v52  ;;  %v671_v3 = vrot.slane %v663_v24, %v1320_v55 }
  0xfd   : > { %560 = vrot.lane.b32.xlu1 %v1244_v25, %s1098_s13  ;;  %495 = vrot.lane.b32.xlu0 %v1244_v25, %s1099_s14 }
  0xfe   : > { %vm1451_vm13 = vcmp.eq.s32.totalorder %v671_v3, 1 }
 0x101   : > { %590 = vrot.lane.b32.xlu1 %v1244_v25, %s1100_s15  ;;  %532 = vrot.lane.b32.xlu0 %v1244_v25, %s1101_s16 }
 0x105   : > { %626 = vrot.lane.b32.xlu1 %v1244_v25, %s1102_s22  ;;  %654 = vrot.lane.b32.xlu0 %v1244_v25, %s1103_s24 }
 0x109   : > { %684 = vrot.lane.b32.xlu0 %v1244_v25, %s1104_s25  ;;  %497 = vrot.lane.b32.xlu1 %v1252_v29, %s1099_s14  ;;  %s953_s14 = sshll.u32 %s1188_s21, 7  ;;  %s1106_s21 = smov [#allocation2]  }
 0x10d   : > { %628 = vrot.lane.b32.xlu0 %v1252_v29, %s1102_s22  ;;  %534 = vrot.lane.b32.xlu1 %v1252_v29, %s1101_s16  ;;  %s1105_s22 = smov 111   ;;  %s862_s16 = scalar_lea.sflag [#allocation3], %s377_s30 }
 0x111   : > { %562 = vrot.lane.b32.xlu1 %v1252_v29, %s1098_s13  ;;  %744 = vperm.xlu0 %1021, %v741_v30  }
 0x115   : > { %592 = vrot.lane.b32.xlu1 %v1252_v29, %s1100_s15  ;;  %752 = vperm.xlu0 %1021, %v749_v31   ;;  %s1528_s15 = scalar_lea.hbm %s1581_s11, %s953_s14 }
 0x119   : > { %712 = vrot.lane.b32.xlu1 %v1244_v25, %s1105_s22  ;;  %848 = vperm.xlu0 %1021, %v845_v32   ;;  %v637_v32 = vrot.slane %v633_v5, %v1314_v52 }
 0x11d   : > { %656 = vrot.lane.b32.xlu1 %v1252_v29, %s1103_s24 }
 0x121   : > { %686 = vrot.lane.b32.xlu1 %v1252_v29, %s1104_s25  ;;  %s1028_s25 = sshll.u32 %s1106_s21, 4  ;;  %s1029_s25 = int_to_ptr.vmem [resolvable:$false] %s1028_s25 }
 0x122   : > { %s1030_s29 = scalar_lea.vmem %s1029_s25, 256 }
 0x125   : > { %714 = vrot.lane.b32.xlu1 %v1252_v29, %s1105_s22  ;;  %s379_s22 = scalar_lea.vmem [#allocation2], %s939_s12 }
 0x126   : > { %s876_s13 = sshll.u32 %s379_s22, 4  ;;  %s1530_s13 = int_to_ptr.vmem [resolvable:$true] %s876_s13 }
 0x127   : > { %s1024_s24 = scalar_lea.vmem %s1530_s13, 128  ;;  %p1031_p0 = scmp.lt.s32.totalorder %s1530_s13, %s1029_s25 }
 0x128   : > { %p1025_p11 = scmp.ne.s32.totalorder %s1530_s13, %s1024_s24  ;;  %p1032_p1 = scmp.lt.s32.totalorder %s1030_s29, %s1024_s24 }
 0x129   : > { %840 = vperm.xlu1 %1022, %v837_v33  }
 0x12a   : > { %p1026_p12 = pnand %p1025_p11, %p1205_p5  ;;  %p1033_p2 = por %p1032_p1, %p1031_p0 }
 0x12c   : > { %p1027_p13 = pneg %p1026_p12 }
 0x12e   : > { %p1034_p3 = pnand %p1033_p2, %p1027_p13 }
 0x16f   : > { %v561_v44 = vpop.permute.xlu1 %560  ;;  %v496_v48 = vpop.permute.xlu0 %495 }
 0x173   : > { %v1308_v49 = vpop.permute.xlu1 %590  ;;  %v533_v53 = vpop.permute.xlu0 %532 }
 0x177   : > { %v1312_v51 = vpop.permute.xlu1 %626  ;;  %v1332_v0 = vpop.permute.xlu0 %654 }
 0x17b   : > { %v498_v59 = vpop.permute.xlu1 %497  ;;  %v1382_v26 = vpop.permute.xlu0 %684 }
 0x17c   : > { %v502_v15 = vsel %vm501_vm9, %v496_v48, %v498_v59  ;;  %v503_v16 = vsel %vm501_vm9, %v498_v59, %v496_v48  ;;  %vm1432_vm9 = vcmp.eq.s32.totalorder %v641_v58, 1 }
 0x17d   : > { %v523_v27 = vsel %vm1337_vm10, %v503_v16, %v1278_v35  ;;  %v524_v28 = vsel %vm1359_vm14, %v502_v15, %v1278_v35  ;;  %vm719_vm10 = vmand %vm661_vm8, %vm567_vm5  ;;  %vm688_vm5 = vcmp.lt.s32.totalorder %v1323_v57, 112  ;;  %vm1483_vm8 = vcmp.eq.s32.totalorder %v695_v45, 1 }
 0x17e   : > { %v530_v54 = vmul.f32 %v1276_v34, %v523_v27  ;;  %v531_v56 = vmul.f32 %v1276_v34, %v524_v28  ;;  %v720_v20 = vsel %vm719_vm10, 1, %v1089_v1  ;;  %vm1487_vm14 = vcmp.eq.s32.totalorder %v699_v19, 1 }
 0x17f   : > { %v535_v6 = vpop.permute.xlu1 %534  ;;  %v629_v5 = vpop.permute.xlu0 %628  ;;  %v724_v27 = vrot.slane %v720_v20, %v1314_v52  ;;  %v728_v28 = vrot.slane %v720_v20, %v1320_v55 }
 0x180   : > { %v537_v12 = vsel %vm536_vm7, %v533_v53, %v535_v6  ;;  %v538_v13 = vsel %vm536_vm7, %v535_v6, %v533_v53  ;;  %vm1428_vm7 = vcmp.eq.s32.totalorder %v637_v32, 1  ;;  %v631_v15 = vsel %vm630_vm2, %v1312_v51, %v629_v5 }
 0x181   : > { %v550_v21 = vsel %vm1347_vm11, %v538_v13, %v1278_v35  ;;  %v551_v22 = vsel %vm1351_vm12, %v537_v12, %v1278_v35  ;;  %vm658_vm11 = vcmp.lt.s32.totalorder %v1323_v57, 113  ;;  %vm1441_vm12 = vcmp.eq.s32.totalorder %v667_v60, 1 }
 0x182   : > { %v556_v48 = vmul.f32 %v1282_v37, %v550_v21  ;;  %v557_v50 = vmul.f32 %v1282_v37, %v551_v22  ;;  %v632_v16 = vsel %vm630_vm2, %v629_v5, %v1312_v51  ;;  %v622_v21 = vmul.f32 %v1286_v39, %v1244_v25 }
 0x183   : > { %v563_v23 = vpop.permute.xlu1 %562  ;;  %v623_v22 = vmul.f32 %v1286_v39, %v1252_v29  ;;  %v644_v51 = vsel %vm1428_vm7, %v631_v15, %v1278_v35  ;;  %v645_v24 = vsel %vm1432_vm9, %v632_v16, %v1278_v35  ;;  %vm762_vm2 = vcmask 64512  }
 0x184   : > { %v565_v30 = vsel %vm564_vm15, %v561_v44, %v563_v23  ;;  %v566_v31 = vsel %vm564_vm15, %v563_v23, %v561_v44  ;;  %v559_v6 = vadd.f32 %v557_v50, %v531_v56  ;;  %vm716_vm15 = vcmp.lt.s32.totalorder %v1323_v57, 111 }
 0x185   : > { %v580_v33 = vsel %vm1364_vm0, %v566_v31, %v1278_v35  ;;  %v581_v47 = vsel %vm1368_vm1, %v565_v30, %v1278_v35  ;;  %vm729_vm0 = vcmp.eq.s32.totalorder %v724_v27, 1  ;;  %vm730_vm1 = vcmp.eq.s32.totalorder %v728_v28, 1 }
 0x186   : > { %v586_v61 = vmul.f32 %v1280_v36, %v580_v33  ;;  %v587_v37 = vmul.f32 %v1280_v36, %v581_v47  ;;  %v558_v36 = vadd.f32 %v556_v48, %v530_v54  ;;  %v650_v33 = vmul.f32 %v1290_v41, %v644_v51 }
 0x187   : > { %v593_v59 = vpop.permute.xlu1 %592  ;;  %v651_v47 = vmul.f32 %v1290_v41, %v645_v24 }
 0x188   : > { %v595_v62 = vsel %vm594_vm3, %v1308_v49, %v593_v59  ;;  %v596_v63 = vsel %vm594_vm3, %v593_v59, %v1308_v49  ;;  %v588_v13 = vadd.f32 %v586_v61, %v558_v36  ;;  %v589_v14 = vadd.f32 %v587_v37, %v559_v6 }
 0x189   : > { %v608_v2 = vsel %vm1400_vm4, %v596_v63, %v1278_v35  ;;  %v609_v34 = vsel %vm1404_vm6, %v595_v62, %v1278_v35 }
 0x18a   : > { %v614_v9 = vmul.f32 %v1284_v38, %v608_v2  ;;  %v615_v49 = vmul.f32 %v1284_v38, %v609_v34 }
 0x18b   : > { %v713_v12 = vpop.permute.xlu1 %712 }
 0x18c   : > { %v616_v17 = vadd.f32 %v614_v9, %v588_v13  ;;  %v617_v18 = vadd.f32 %v615_v49, %v589_v14 }
 0x18e   : > { %v624_v30 = vadd.f32 %v622_v21, %v616_v17  ;;  %v625_v31 = vadd.f32 %v623_v22, %v617_v18 }
 0x18f   : > { %v657_v23 = vpop.permute.xlu1 %656 }
 0x190   : > { %v659_v1 = vsel %vm658_vm11, %v1332_v0, %v657_v23  ;;  %v660_v25 = vsel %vm658_vm11, %v657_v23, %v1332_v0  ;;  %v652_v54 = vadd.f32 %v650_v33, %v624_v30  ;;  %v745_v62 = vpop.permute.xlu0 %744 }
 0x191   : > { %v674_v29 = vsel %vm1441_vm12, %v659_v1, %v1278_v35  ;;  %v675_v39 = vsel %vm1451_vm13, %v660_v25, %v1278_v35 }
 0x192   : > { %v680_v52 = vmul.f32 %v1294_v43, %v674_v29  ;;  %v681_v55 = vmul.f32 %v1294_v43, %v675_v39  ;;  %v653_v43 = vadd.f32 %v651_v47, %v625_v31 }
 0x193   : > { %v687_v48 = vpop.permute.xlu1 %686 }
 0x194   : > { %v689_v50 = vsel %vm688_vm5, %v1382_v26, %v687_v48  ;;  %v690_v53 = vsel %vm688_vm5, %v687_v48, %v1382_v26  ;;  %v682_v60 = vadd.f32 %v680_v52, %v652_v54  ;;  %v683_v61 = vadd.f32 %v681_v55, %v653_v43  ;;  %v753_v49 = vpop.permute.xlu0 %752 }
 0x195   : > { %v702_v44 = vsel %vm1483_vm8, %v689_v50, %v1278_v35  ;;  %v703_v41 = vsel %vm1487_vm14, %v690_v53, %v1278_v35 }
 0x196   : > { %v708_v56 = vmul.f32 %v1288_v40, %v702_v44  ;;  %v709_v58 = vmul.f32 %v1288_v40, %v703_v41 }
 0x197   : > { %v715_v59 = vpop.permute.xlu1 %714 }
 0x198   : > { %v717_v26 = vsel %vm716_vm15, %v713_v12, %v715_v59  ;;  %v718_v37 = vsel %vm716_vm15, %v715_v59, %v713_v12  ;;  %v710_v34 = vadd.f32 %v708_v56, %v682_v60  ;;  %v711_v40 = vadd.f32 %v709_v58, %v683_v61  ;;  %v849_v46 = vpop.permute.xlu0 %848 }
 0x199   : > { %v731_v63 = vsel %vm729_vm0, %v717_v26, %v1278_v35  ;;  %v732_v2 = vsel %vm730_vm1, %v718_v37, %v1278_v35  ;;  %v761_v35 = vld [vmem:[%s1578_s8] sm:$0xf] }
 0x19a   : > { %v737_v3 = vmul.f32 %v1292_v42, %v731_v63  ;;  %v738_v4 = vmul.f32 %v1292_v42, %v732_v2 }
 0x19c   : > { %v740_v5 = vadd.f32 %v738_v4, %v711_v40  ;;  %v739_v36 = vadd.f32 %v737_v3, %v710_v34 }
 0x19e   : > { %v748_v6 = vmul.f32 %v745_v62, %v740_v5  ;;  %v747_v9 = vmul.f32 %v745_v62, %v739_v36 }
 0x1a0   : > { %v756_v10 = vadd.f32 %v753_v49, %v748_v6  ;;  %v755_v57 = vadd.f32 %v753_v49, %v747_v9 }
 0x1a2   : > { %v758_v11 = vmax.f32 %v756_v10, 0.0  ;;  %v757_v12 = vmax.f32 %v755_v57, 0.0 }
 0x1a4   : > { %v760_v13 = vmin.f32 %v758_v11, 6.0  ;;  %v759_v14 = vmin.f32 %v757_v12, 6.0 }
 0x1a6   : > { %766 = vmatprep.subr.mxu1 %v760_v13 }
 0x1a7   : > { %767 = vmatpush1.msra.mxu1 %v759_v14 }
 0x1a8   : > { %946 = vmatmul.mubr.msk.f32.vlgmr.msra.gmra.mrb[0].mxu1 %vm762_vm2, %v761_v35  ;;  %v841_v42 = vpop.permute.xlu1 %840 }
 0x27b   : > { %v832_v38 = vpop.f32.mrb[0].mxu1 }
 0x27c   : > { %v843_v15 = vmul.f32 %v841_v42, %v832_v38  ;;  %v834_v16 = vpop.f32.mrb[1].mxu1 }
 0x27d   : > { %v844_v45 = vmul.f32 %v841_v42, %v834_v16 }
 0x27e   : > { %v851_v17 = vadd.f32 %v849_v46, %v843_v15 }
 0x27f   : > { %v852_v18 = vadd.f32 %v849_v46, %v844_v45 }
 0x280   : > { %v854_v19 = vadd.f32 %v851_v17, %v1231_v7 }
 0x281   : > { %v855_v20 = vadd.f32 %v852_v18, %v1235_v8 }
 0x283   : > { %v858_v21 = vcombine.low %v854_v19, %v855_v20 }
 0x285   : > { %860 = vst [vmem:[%s379_s22] sm:$0xff] %v858_v21 }
 0x286   : > { %1037 = shalt.err (!%p1034_p3)
}
 0x287   : > { %s1038_s30 = scalar_lea.hbm %s1528_s15, 128  ;;  %s1042_s22 = scalar_lea.hbm %s1581_s11, 256 }
 0x288   : > { %p1039_p4 = scmp.ne.s32.totalorder %s1528_s15, %s1038_s30  ;;  %p1043_p9 = scmp.lt.u32.totalorder %s1528_s15, %s1581_s11 }
 0x289   : > { %p1044_p10 = scmp.lt.u32.totalorder %s1042_s22, %s1038_s30  ;;  %p1046_p12 = scmp.lt.u32.totalorder %s1038_s30, %s1528_s15 }
 0x28a   : > { %p1040_p7 = pnand %p1039_p4, %p1205_p5 }
 0x28b   : > { %p1045_p11 = por %p1044_p10, %p1043_p9 }
 0x28c   : > { %p1041_p8 = pneg %p1040_p7 }
 0x28d   : > { %p1047_p13 = por %p1046_p12, %p1045_p11 }
 0x28f   : > { %p1048_p0 = pnand %p1047_p13, %p1041_p8 }
 0x291   : > { %1051 = shalt.err (!%p1048_p0)
}
 0x292   : > { %954 = dma.vmem_to_hbm [thread:$0]  (%p1205_p5), %s1530_s13, 128, %s1528_s15, %s862_s16  }
 0x293 PF: > { %p960_p1 = scmp.ge.s32.totalorder %s1086_s20, 2  ;;  %s888_s24 = sand.u32 1, %s1074_s17  }
 0x294   : > { %s889_s21 = scalar_lea.sflag [#allocation3], %s888_s24 }
 0x295   : > { %p957_p2 = pnand %p960_p1, %p1209_p6 }
 0x297   : > { %1069 = dma.done.wait (!%p957_p2), %s889_s21, 128  }
 0x298   : > { %1071 = vsyncadd (!%p957_p2), %s889_s21, 4294967168  ;;  %p21_p3 = scmp.ge.s32.totalorder %s1192_s23, 4   ;;  %s1616_s17 = smov %s1078_s18 }
 0x299   : > { %s1617_s18 = smov %s1082_s19  ;;  %s1618_s19 = smov %s1203_s26 }
 0x29a   : > { %s1619_s20 = smov %s1192_s23  ;;  %23 = sbr.rel (!%p21_p3) target bundleno = 6 (0x6), region = 100 }
 0x2a1   :  { %894 = vsyncpa [#allocation3], 1 }
 0x2a2   :  { %896 = vsyncpa [#allocation3 + $0x1], 1 }

</bundles_post_ra>
